<compile_context>
chip_gen: v7x
topology: tpu7x:2x2x1
jax: 0.10.0
libtpu: 0.0.40
codegen_flags: <defaults>
</compile_context>

<pallas_src>
import functools
import math

import jax
import jax.numpy as jnp
from jax.experimental import pallas as pl
from jax.experimental.pallas import tpu as pltpu

HIDDEN = 32
LANE = 128      # lane granularity (batch axis)
TB_MAX = 2048   # max batch-tile width (lanes)


def _round_up(x, m):
    return (x + m - 1) // m * m


def _ac_kernel(xt_ref, w1t_ref, b1_ref, w2t_ref, b2_ref, wht_ref, bh_ref,
               out_ref, *, n_actions):
    # Transposed domain: features on sublanes, batch on lanes.
    xt = xt_ref[...].astype(jnp.bfloat16)                                # (D, TB)

    # Layer 1: (H, D) @ (D, TB) -> (H, TB), bf16 operands, f32 accumulate.
    h = jnp.dot(w1t_ref[...], xt,
                preferred_element_type=jnp.float32) + b1_ref[...]        # (H, TB)
    h = jnp.maximum(h, 0.0)

    # Layer 2: (H, H) @ (H, TB) -> (H, TB).
    h = jnp.dot(w2t_ref[...], h.astype(jnp.bfloat16),
                preferred_element_type=jnp.float32) + b2_ref[...]        # (H, TB)
    h = jnp.maximum(h, 0.0)

    # Fused heads, kept in f32 (tiny K=32, N=8): (NH, H) @ (H, TB) -> (NH, TB).
    raw = jnp.dot(wht_ref[...], h,
                  preferred_element_type=jnp.float32) + bh_ref[...]      # (NH, TB)

    # Per-row activation: rows [0, A) -> tanh, [A, 2A) -> softplus + 1e-8,
    # row 2A -> identity (critic), padded rows stay exactly zero.
    row = jax.lax.broadcasted_iota(jnp.int32, raw.shape, 0)
    mu = jnp.tanh(raw)
    softplus = jnp.maximum(raw, 0.0) + jnp.log(1.0 + jnp.exp(-jnp.abs(raw)))
    sigma = softplus + 1e-8
    out = jnp.where(row < n_actions, mu,
                    jnp.where(row < 2 * n_actions, sigma, raw))
    out_ref[...] = out.astype(out_ref.dtype)


def prepare_params(params, n_actions):
    """One-time (out of the hot path): transpose weights, pre-cast to bf16,
    and fuse the three heads into one zero-padded (NH, H) f32 weight."""
    A = n_actions
    H = params["w1"].shape[1]
    NH = _round_up(2 * A + 1, 8)

    wh = jnp.zeros((NH, H), jnp.float32)
    wh = wh.at[:A, :].set(params["wmu"].T)
    wh = wh.at[A:2 * A, :].set(params["wsig"].T)
    wh = wh.at[2 * A, :].set(params["wc"][:, 0])
    bh = jnp.zeros((NH, 1), jnp.float32)
    bh = bh.at[:A, 0].set(params["bmu"][0])
    bh = bh.at[A:2 * A, 0].set(params["bsig"][0])
    bh = bh.at[2 * A, 0].set(params["bc"][0, 0])

    return {
        "w1t": params["w1"].T.astype(jnp.bfloat16),   # (H, D)
        "b1": params["b1"].reshape(-1, 1),            # (H, 1) f32
        "w2t": params["w2"].T.astype(jnp.bfloat16),   # (H, H)
        "b2": params["b2"].reshape(-1, 1),            # (H, 1) f32
        "wht": wh,                                    # (NH, H) f32
        "bh": bh,                                     # (NH, 1) f32
        "n_actions": A,
    }


def actor_critic_forward(state, prep):
    """Pallas forward pass. state: (B, D) float32. Returns (mu, sigma, value)."""
    B, D = state.shape
    A = prep["n_actions"]
    H = prep["w1t"].shape[0]
    NH = prep["wht"].shape[0]

    # Adaptive batch tiling along the lane axis:
    #  - tile width multiple of 128, capped at TB_MAX,
    #  - grid >= 2 once B >= 256 (v7x megacore), last tile not mostly padding.
    B128 = _round_up(B, LANE)
    n_tiles = max(-(-B128 // TB_MAX), min(2, B128 // LANE))
    TB = _round_up(-(-B128 // n_tiles), LANE)
    padded_B = n_tiles * TB

    state_t = state.T                                            # (D, B)
    if padded_B != B:
        state_t = jnp.pad(state_t, ((0, 0), (0, padded_B - B)))  # (D, padded_B)

    cost = pl.CostEstimate(
        flops=2 * padded_B * (D * H + H * H + H * NH),
        transcendentals=3 * padded_B * NH,
        bytes_accessed=4 * (padded_B * D + padded_B * NH
                            + H * H + H * D + H * NH + 2 * H + 2 * NH),
    )

    out = pl.pallas_call(
        functools.partial(_ac_kernel, n_actions=A),
        out_shape=jax.ShapeDtypeStruct((NH, padded_B), jnp.float32),
        grid_spec=pltpu.PrefetchScalarGridSpec(
            num_scalar_prefetch=0,
            grid=(n_tiles,),
            in_specs=[
                pl.BlockSpec((D, TB), lambda i: (0, i)),    # state^T (tiled)
                pl.BlockSpec((H, D), lambda i: (0, 0)),     # W1^T (resident, bf16)
                pl.BlockSpec((H, 1), lambda i: (0, 0)),     # b1
                pl.BlockSpec((H, H), lambda i: (0, 0)),     # W2^T (bf16)
                pl.BlockSpec((H, 1), lambda i: (0, 0)),     # b2
                pl.BlockSpec((NH, H), lambda i: (0, 0)),    # fused head W (f32)
                pl.BlockSpec((NH, 1), lambda i: (0, 0)),    # fused head b
            ],
            out_specs=pl.BlockSpec((NH, TB), lambda i: (0, i)),
        ),
        compiler_params=pltpu.CompilerParams(
            dimension_semantics=("parallel",)),
        cost_estimate=cost,
    )(state_t, prep["w1t"], prep["b1"], prep["w2t"], prep["b2"],
      prep["wht"], prep["bh"])

    mu = out[:A, :B].T
    sigma = out[A:2 * A, :B].T
    value = out[2 * A:2 * A + 1, :B].T
    return mu, sigma, value


def sample_action(key, mu, sigma):
    """Normal(mu, sigma).sample() followed by clip(-1, 1), as in the module."""
    noise = jax.random.normal(key, mu.shape, mu.dtype)
    return jnp.clip(mu + sigma * noise, -1.0, 1.0)


def init_params(key, input_dim, n_actions, hidden=HIDDEN):
    """Mimics PyTorch's default Linear init: U(+/- 1/sqrt(fan_in))."""
    ks = jax.random.split(key, 10)

    def u(k, shape, fan_in):
        bound = 1.0 / math.sqrt(fan_in)
        return jax.random.uniform(k, shape, jnp.float32, -bound, bound)

    return {
        "w1": u(ks[0], (input_dim, hidden), input_dim),
        "b1": u(ks[1], (1, hidden), input_dim),
        "w2": u(ks[2], (hidden, hidden), hidden),
        "b2": u(ks[3], (1, hidden), hidden),
        "wmu": u(ks[4], (hidden, n_actions), hidden),
        "bmu": u(ks[5], (1, n_actions), hidden),
        "wsig": u(ks[6], (hidden, n_actions), hidden),
        "bsig": u(ks[7], (1, n_actions), hidden),
        "wc": u(ks[8], (hidden, 1), hidden),
        "bc": u(ks[9], (1, 1), hidden),
    }


def reference_forward(state, params):
    """Pure-JAX f32 reference (mirrors the torch module's heads exactly)."""
    h = jnp.maximum(state @ params["w1"] + params["b1"], 0.0)
    h = jnp.maximum(h @ params["w2"] + params["b2"], 0.0)
    mu = jnp.tanh(h @ params["wmu"] + params["bmu"])
    sigma = jax.nn.softplus(h @ params["wsig"] + params["bsig"]) + 1e-8
    value = h @ params["wc"] + params["bc"]
    return mu, sigma, value


if __name__ == "__main__":
    # Shapes consistent with the module: input_dims=(16,), n_actions=2, batch=8.
    B, D, A = 8, 16, 2
    key = jax.random.PRNGKey(0)
    k_state, k_params, k_sample = jax.random.split(key, 3)

    state = jax.random.normal(k_state, (B, D), dtype=jnp.float32)
    params = init_params(k_params, D, A)
    prep = prepare_params(params, A)           # one-time, outside the hot path

    mu, sigma, value = actor_critic_forward(state, prep)
    action = sample_action(k_sample, mu, sigma)
    jax.block_until_ready((mu, sigma, value, action))

    # Correctness vs. pure-JAX f32 reference (loose tolerance: bf16 MXU operands
    # in the two hidden layers; head matmul is f32).
    ref_mu, ref_sigma, ref_value = reference_forward(state, params)
    assert mu.shape == (B, A) and sigma.shape == (B, A) and value.shape == (B, 1)
    assert action.shape == (B, A)
    assert bool(jnp.all(sigma > 0))
    assert bool(jnp.all((action >= -1.0) & (action <= 1.0)))
    assert jnp.allclose(mu, ref_mu, atol=5e-2, rtol=5e-2)
    assert jnp.allclose(sigma, ref_sigma, atol=5e-2, rtol=5e-2)
    assert jnp.allclose(value, ref_value, atol=5e-2, rtol=5e-2)

    # TODO(synk): torch.distributions.Normal object is not representable in a
    # kernel; (mu, sigma) are returned and sampling is done in the wrapper.
    print("KERNEL_OK")
</pallas_src>

<mosaic_0001>
module attributes {stable_mosaic.version = 11 : i64} {
  func.func @_ac_kernel(%arg0: i32, %arg1: memref<16x128xf32, #tpu.memory_space<vmem>>, %arg2: memref<32x16xbf16, #tpu.memory_space<vmem>>, %arg3: memref<32x1xf32, #tpu.memory_space<vmem>>, %arg4: memref<32x32xbf16, #tpu.memory_space<vmem>>, %arg5: memref<32x1xf32, #tpu.memory_space<vmem>>, %arg6: memref<8x32xf32, #tpu.memory_space<vmem>>, %arg7: memref<8x1xf32, #tpu.memory_space<vmem>>, %arg8: memref<8x128xf32, #tpu.memory_space<vmem>>) attributes {dimension_semantics = [#tpu.dimension_semantics<parallel>], iteration_bounds = array<i64: 1>, scalar_prefetch = 0 : i64, scratch_operands = 0 : i64, tpu.core_type = #tpu.core_type<tc>, window_params = [{transform_indices = @transform_0, window_bounds = array<i64: 16, 128>}, {pipeline_mode = #tpu.pipeline_mode<synchronous>, transform_indices = @transform_1, window_bounds = array<i64: 32, 16>}, {pipeline_mode = #tpu.pipeline_mode<synchronous>, transform_indices = @transform_2, window_bounds = array<i64: 32, 1>}, {pipeline_mode = #tpu.pipeline_mode<synchronous>, transform_indices = @transform_3, window_bounds = array<i64: 32, 32>}, {pipeline_mode = #tpu.pipeline_mode<synchronous>, transform_indices = @transform_4, window_bounds = array<i64: 32, 1>}, {pipeline_mode = #tpu.pipeline_mode<synchronous>, transform_indices = @transform_5, window_bounds = array<i64: 8, 32>}, {pipeline_mode = #tpu.pipeline_mode<synchronous>, transform_indices = @transform_6, window_bounds = array<i64: 8, 1>}, {transform_indices = @transform_7, window_bounds = array<i64: 8, 128>}]} {
    %c0 = arith.constant 0 : index
    %c0_0 = arith.constant 0 : index
    %0 = vector.load %arg1[%c0, %c0_0] : memref<16x128xf32, #tpu.memory_space<vmem>>, vector<16x128xf32>
    %1 = arith.truncf %0 : vector<16x128xf32> to vector<16x128xbf16>
    %c0_1 = arith.constant 0 : index
    %c0_2 = arith.constant 0 : index
    %2 = vector.load %arg2[%c0_1, %c0_2] : memref<32x16xbf16, #tpu.memory_space<vmem>>, vector<32x16xbf16>
    %cst = arith.constant dense<0.000000e+00> : vector<32x128xf32>
    %3 = tpu.matmul %2, %1, %cst {dimension_numbers = #tpu.dot_dimension_numbers<[1], [0], [0], [1], [0, 0, 1, 1], [], []>} : vector<32x16xbf16>, vector<16x128xbf16>, vector<32x128xf32> -> vector<32x128xf32>
    %c0_3 = arith.constant 0 : index
    %c0_4 = arith.constant 0 : index
    %4 = vector.load %arg3[%c0_3, %c0_4] : memref<32x1xf32, #tpu.memory_space<vmem>>, vector<32x1xf32>
    %5 = vector.broadcast %4 : vector<32x1xf32> to vector<32x128xf32>
    %6 = arith.addf %3, %5 : vector<32x128xf32>
    %cst_5 = arith.constant 0.000000e+00 : f32
    %7 = vector.broadcast %cst_5 : f32 to vector<32x128xf32>
    %8 = arith.maximumf %6, %7 : vector<32x128xf32>
    %c0_6 = arith.constant 0 : index
    %c0_7 = arith.constant 0 : index
    %9 = vector.load %arg4[%c0_6, %c0_7] : memref<32x32xbf16, #tpu.memory_space<vmem>>, vector<32x32xbf16>
    %10 = arith.truncf %8 : vector<32x128xf32> to vector<32x128xbf16>
    %cst_8 = arith.constant dense<0.000000e+00> : vector<32x128xf32>
    %11 = tpu.matmul %9, %10, %cst_8 {dimension_numbers = #tpu.dot_dimension_numbers<[1], [0], [0], [1], [0, 0, 1, 1], [], []>} : vector<32x32xbf16>, vector<32x128xbf16>, vector<32x128xf32> -> vector<32x128xf32>
    %c0_9 = arith.constant 0 : index
    %c0_10 = arith.constant 0 : index
    %12 = vector.load %arg5[%c0_9, %c0_10] : memref<32x1xf32, #tpu.memory_space<vmem>>, vector<32x1xf32>
    %13 = vector.broadcast %12 : vector<32x1xf32> to vector<32x128xf32>
    %14 = arith.addf %11, %13 : vector<32x128xf32>
    %cst_11 = arith.constant 0.000000e+00 : f32
    %15 = vector.broadcast %cst_11 : f32 to vector<32x128xf32>
    %16 = arith.maximumf %14, %15 : vector<32x128xf32>
    %c0_12 = arith.constant 0 : index
    %c0_13 = arith.constant 0 : index
    %17 = vector.load %arg6[%c0_12, %c0_13] : memref<8x32xf32, #tpu.memory_space<vmem>>, vector<8x32xf32>
    %cst_14 = arith.constant dense<0.000000e+00> : vector<8x128xf32>
    %18 = tpu.matmul %17, %16, %cst_14 {dimension_numbers = #tpu.dot_dimension_numbers<[1], [0], [0], [1], [0, 0, 1, 1], [], []>} : vector<8x32xf32>, vector<32x128xf32>, vector<8x128xf32> -> vector<8x128xf32>
    %c0_15 = arith.constant 0 : index
    %c0_16 = arith.constant 0 : index
    %19 = vector.load %arg7[%c0_15, %c0_16] : memref<8x1xf32, #tpu.memory_space<vmem>>, vector<8x1xf32>
    %20 = vector.broadcast %19 : vector<8x1xf32> to vector<8x128xf32>
    %21 = arith.addf %18, %20 : vector<8x128xf32>
    %22 = tpu.iota {dimensions = array<i32: 0>} : vector<8x128xi32>
    %23 = math.tanh %21 : vector<8x128xf32>
    %cst_17 = arith.constant 0.000000e+00 : f32
    %24 = vector.broadcast %cst_17 : f32 to vector<8x128xf32>
    %25 = arith.maximumf %21, %24 : vector<8x128xf32>
    %26 = math.absf %21 : vector<8x128xf32>
    %cst_18 = arith.constant 0.000000e+00 : f32
    %27 = vector.broadcast %cst_18 : f32 to vector<8x128xf32>
    %28 = arith.subf %27, %26 : vector<8x128xf32>
    %29 = math.exp %28 : vector<8x128xf32>
    %cst_19 = arith.constant 1.000000e+00 : f32
    %30 = vector.broadcast %cst_19 : f32 to vector<8x128xf32>
    %31 = arith.addf %30, %29 : vector<8x128xf32>
    %32 = math.log %31 : vector<8x128xf32>
    %33 = arith.addf %25, %32 : vector<8x128xf32>
    %cst_20 = arith.constant 9.99999993E-9 : f32
    %34 = vector.broadcast %cst_20 : f32 to vector<8x128xf32>
    %35 = arith.addf %33, %34 : vector<8x128xf32>
    %c2_i32 = arith.constant 2 : i32
    %36 = vector.broadcast %c2_i32 : i32 to vector<8x128xi32>
    %37 = arith.cmpi slt, %22, %36 : vector<8x128xi32>
    %c4_i32 = arith.constant 4 : i32
    %38 = vector.broadcast %c4_i32 : i32 to vector<8x128xi32>
    %39 = arith.cmpi slt, %22, %38 : vector<8x128xi32>
    %40 = arith.select %39, %35, %21 : vector<8x128xi1>, vector<8x128xf32>
    %41 = arith.select %37, %23, %40 : vector<8x128xi1>, vector<8x128xf32>
    %c0_21 = arith.constant 0 : index
    %c0_22 = arith.constant 0 : index
    %42 = vector.load %arg8[%c0_21, %c0_22] : memref<8x128xf32, #tpu.memory_space<vmem>>, vector<8x128xf32>
    tpu.vector_store %arg8[%c0_21, %c0_22], %41 {strides = array<i32>} : memref<8x128xf32, #tpu.memory_space<vmem>>, vector<8x128xf32>,
    return
  }
  func.func @transform_0(%arg0: i32) -> (i32, i32) {
    %c0_i32 = arith.constant 0 : i32
    %c0_i32_0 = arith.constant 0 : i32
    return %c0_i32, %arg0 : i32, i32
  }
  func.func @transform_1(%arg0: i32) -> (i32, i32) {
    %c0_i32 = arith.constant 0 : i32
    %c0_i32_0 = arith.constant 0 : i32
    %c0_i32_1 = arith.constant 0 : i32
    return %c0_i32, %c0_i32_0 : i32, i32
  }
  func.func @transform_2(%arg0: i32) -> (i32, i32) {
    %c0_i32 = arith.constant 0 : i32
    %c0_i32_0 = arith.constant 0 : i32
    %c0_i32_1 = arith.constant 0 : i32
    return %c0_i32, %c0_i32_0 : i32, i32
  }
  func.func @transform_3(%arg0: i32) -> (i32, i32) {
    %c0_i32 = arith.constant 0 : i32
    %c0_i32_0 = arith.constant 0 : i32
    %c0_i32_1 = arith.constant 0 : i32
    return %c0_i32, %c0_i32_0 : i32, i32
  }
  func.func @transform_4(%arg0: i32) -> (i32, i32) {
    %c0_i32 = arith.constant 0 : i32
    %c0_i32_0 = arith.constant 0 : i32
    %c0_i32_1 = arith.constant 0 : i32
    return %c0_i32, %c0_i32_0 : i32, i32
  }
  func.func @transform_5(%arg0: i32) -> (i32, i32) {
    %c0_i32 = arith.constant 0 : i32
    %c0_i32_0 = arith.constant 0 : i32
    %c0_i32_1 = arith.constant 0 : i32
    return %c0_i32, %c0_i32_0 : i32, i32
  }
  func.func @transform_6(%arg0: i32) -> (i32, i32) {
    %c0_i32 = arith.constant 0 : i32
    %c0_i32_0 = arith.constant 0 : i32
    %c0_i32_1 = arith.constant 0 : i32
    return %c0_i32, %c0_i32_0 : i32, i32
  }
  func.func @transform_7(%arg0: i32) -> (i32, i32) {
    %c0_i32 = arith.constant 0 : i32
    %c0_i32_0 = arith.constant 0 : i32
    return %c0_i32, %arg0 : i32, i32
  }
}

</mosaic_0001>

<bundles_post_ra>
// kernel: tpu_custom_call.1
= control target key start
LH: loop header
LB: loop body
LE: loop exit
PB: predicated region body
PF: predicated region fallthrough
CT: control target
= control target key end

     0   :  { %vm69_vm0 = vcmask 130048   ;;  %v434_v4 = vmov 0   ;;  %s544_s0 = inlined_call_operand.vmem [shape: f32[16,128], index: 0, kind: input, shape index: {}]   ;;  %s545_s1 = inlined_call_operand.vmem [shape: bf16[32,16], index: 1, kind: input, shape index: {}]   ;;  %s546_s2 = inlined_call_operand.vmem [shape: f32[32,1], index: 2, kind: input, shape index: {}]   ;;  %s547_s3 = inlined_call_operand.vmem [shape: bf16[32,32], index: 3, kind: input, shape index: {}]   ;;  %s548_s4 = inlined_call_operand.vmem [shape: f32[32,1], index: 4, kind: input, shape index: {}]   ;;  %s549_s5 = inlined_call_operand.vmem [shape: f32[8,32], index: 5, kind: input, shape index: {}]   ;;  %s550_s6 = inlined_call_operand.vmem [shape: f32[8,1], index: 6, kind: input, shape index: {}]   ;;  %s551_s7 = inlined_call_operand.hbm [shape: f32[8,128], index: 7, kind: output, shape index: {}]  }
   0x1   :  { %v28_v0 = vld [vmem:[%s544_s0] sm:$0xff]  ;;  %v29_v1 = vld [vmem:[%s544_s0 + $0x8] sm:$0xff]  ;;  %398 = vset.pattern.permute.xlu0 %v434_v4  ;;  %399 = vset.pattern.permute.xlu1 %v434_v4  ;;  %v37_v7 = vld [vmem:[%s546_s2 + $0x10] sm:$0xff] }
   0x2   :  { %v30_v2 = vpack.c.bf16 %v29_v1, %v28_v0  ;;  %v400_v3 = vld [vmem:[%s545_s1] sm:$0xff]   ;;  %v401_v6 = vld [vmem:[%s545_s1 + $0x8] sm:$0xff]   ;;  %51 = vperm.xlu1 %399, %v37_v7   ;;  %v38_v9 = vld [vmem:[%s546_s2 + $0x18] sm:$0xff] }
   0x3   :  { %v35_v5 = vld [vmem:[%s546_s2] sm:$0xff]  ;;  %364 = vmatprep.mubr.msk.bf16.mxu0 %vm69_vm0, %v400_v3  ;;  %v36_v8 = vld [vmem:[%s546_s2 + $0x8] sm:$0xff] }
   0x4   :  { %362 = vmatprep.subr.bf16.mxu0 %v30_v2  ;;  %41 = vperm.xlu0 %398, %v35_v5  }
   0x5   :  { %363 = vmatpush3.bf16.msra.mxu0 %v30_v2 }
   0x8   :  { %365 = vmatmul.mubr.msk.bf16.vlgmr.msra.gmra.mrb[0].mxu0 %vm69_vm0, %v401_v6 }
   0x9   :  { %12 = vsyncpa [#allocation3], 0  ;;  %46 = vperm.xlu0 %398, %v36_v8   ;;  %v135_v10 = vld [vmem:[%s548_s4] sm:$0xff]  ;;  %56 = vperm.xlu1 %399, %v38_v9   ;;  %v136_v11 = vld [vmem:[%s548_s4 + $0x8] sm:$0xff]  ;;  %vm169_vm1 = vcmask 261120   ;;  %v435_v35 = vmov 0.0|0.0   ;;  %v309_v1 = vlaneseq }
   0xa   :  { %v137_v12 = vld [vmem:[%s548_s4 + $0x10] sm:$0xff]  ;;  %v138_v13 = vld [vmem:[%s548_s4 + $0x18] sm:$0xff]  ;;  %v230_v14 = vld [vmem:[%s550_s6] sm:$0xff]  ;;  %387 = vmatprep.subr.bf16.mxu0 %v435_v35  ;;  %vm436_vm2 = vmmov 0   ;;  %v437_v36 = vmov 0.0  }
   0xb   :  { %v402_v15 = vld [vmem:[%s547_s3] sm:$0xff]   ;;  %v403_v34 = vld [vmem:[%s547_s3 + $0x8] sm:$0xff]   ;;  %384 = vmatprep.mubr.msk.f32.mxu0 %vm436_vm2, %v437_v36  ;;  %v310_v3 = vshrl.u32 %v309_v1, 7 }
   0xc   :  { %372 = vmatprep.mubr.msk.bf16.mxu1 %vm169_vm1, %v402_v15  ;;  %v229_v55 = vld [vmem:[%s549_s5] sm:$0xff]  ;;  %s438_s5 = smov [#allocation2]  }
   0xd   :  { %141 = vperm.xlu0 %398, %v135_v10   ;;  %146 = vperm.xlu1 %399, %v136_v11   ;;  %vm323_vm3 = vcmp.lt.s32.totalorder %v310_v3, 4  ;;  %s333_s27 = sshll.u32 %s438_s5, 4  ;;  %vm322_vm4 = vcmp.lt.s32.totalorder %v310_v3, 2  ;;  %s334_s27 = int_to_ptr.vmem [resolvable:$true] %s333_s27 }
   0xe   :  { %s410_s28 = scalar_lea.vmem %s334_s27, 128  ;;  %p415_p1 = scmp.lt.s32.totalorder %s334_s27, %s334_s27 }
   0xf   :  { %p411_p0 = scmp.ne.s32.totalorder %s334_s27, %s410_s28  ;;  %p416_p2 = scmp.lt.s32.totalorder %s410_s28, %s410_s28 }
  0x11   :  { %151 = vperm.xlu0 %398, %v137_v12   ;;  %156 = vperm.xlu1 %399, %v138_v13   ;;  %p417_p3 = por %p416_p2, %p415_p1 }
  0x13   :  { %p418_p4 = pnand %p417_p3, %p411_p0 }
  0x15   :  { %233 = vperm.xlu0 %398, %v230_v14  }
  0x81   :  { %v52_v16 = vpop.permute.xlu1 %51 }
  0x83   :  { %v42_v17 = vpop.permute.xlu0 %41 }
  0x88   :  { %v57_v21 = vpop.permute.xlu1 %56  ;;  %v47_v24 = vpop.permute.xlu0 %46 }
  0x8c   :  { %v142_v37 = vpop.permute.xlu0 %141  ;;  %v147_v38 = vpop.permute.xlu1 %146 }
  0x90   :  { %v152_v39 = vpop.permute.xlu0 %151  ;;  %v157_v43 = vpop.permute.xlu1 %156 }
  0x94   :  { %v234_v56 = vpop.permute.xlu0 %233 }
  0xdb   :  { %v366_v18 = vpop.f32.mrb[0].mxu0 }
  0xdc   :  { %v119_v19 = vadd.f32 %v366_v18, %v52_v16  ;;  %v110_v20 = vpop.f32.mrb[1].mxu0 }
  0xdd   :  { %v111_v22 = vadd.f32 %v110_v20, %v42_v17  ;;  %v367_v23 = vpop.f32.mrb[2].mxu0 }
  0xde   :  { %v122_v25 = vadd.f32 %v367_v23, %v57_v21  ;;  %v113_v26 = vpop.f32.mrb[3].mxu0  ;;  %v127_v28 = vmax.f32 %v119_v19, 0.0 }
  0xdf   :  { %v114_v27 = vadd.f32 %v113_v26, %v47_v24  ;;  %v125_v30 = vmax.f32 %v111_v22, 0.0 }
  0xe0   :  { %v128_v29 = vmax.f32 %v122_v25, 0.0 }
  0xe1   :  { %v126_v31 = vmax.f32 %v114_v27, 0.0 }
  0xe2   :  { %v134_v32 = vpack.c.bf16 %v128_v29, %v127_v28 }
  0xe3   :  { %v133_v33 = vpack.c.bf16 %v126_v31, %v125_v30 }
  0xe5   :  { %368 = vmatprep.subr.bf16.mxu1 %v133_v33 }
  0xe6   :  { %369 = vmatpush3.bf16.msra.mxu1 %v133_v33 }
  0xe7   :  { %370 = vmatprep.subr.bf16.mxu1 %v134_v32 }
  0xea   :  { %371 = vmatpush3.bf16.msra.mxu1 %v134_v32 }
  0xed   :  { %373 = vmatmul.mubr.msk.bf16.vlgmr.msra.gmra.mrb[0].mxu1 %vm169_vm1, %v403_v34 }
 0x1c0   :  { %v374_v40 = vpop.f32.mrb[0].mxu1 }
 0x1c1   :  { %v219_v41 = vadd.f32 %v374_v40, %v152_v39  ;;  %v210_v42 = vpop.f32.mrb[1].mxu1 }
 0x1c2   :  { %v211_v44 = vadd.f32 %v210_v42, %v142_v37  ;;  %v375_v45 = vpop.f32.mrb[2].mxu1 }
 0x1c3   :  { %v222_v46 = vadd.f32 %v375_v45, %v157_v43  ;;  %v213_v47 = vpop.f32.mrb[3].mxu1  ;;  %v227_v49 = vmax.f32 %v219_v41, 0.0 }
 0x1c4   :  { %v214_v48 = vadd.f32 %v213_v47, %v147_v38  ;;  %v225_v51 = vmax.f32 %v211_v44, 0.0 }
 0x1c5   :  { %v228_v50 = vmax.f32 %v222_v46, 0.0 }
 0x1c6   :  { %v226_v52 = vmax.f32 %v214_v48, 0.0 }
 0x1c7   :  { %v391_v53 = vpack.c.bf16 %v228_v50, %v227_v49 }
 0x1c8   :  { %v388_v54 = vpack.c.bf16 %v226_v52, %v225_v51 }
 0x1ca   :  { %389 = vmatpush3.bf16.msra.mxu0 %v388_v54 }
 0x1cb   :  { %390 = vmatprep.subr.bf16.mxu0 %v435_v35 }
 0x1ce   :  { %392 = vmatpush3.bf16.msra.mxu0 %v391_v53 }
 0x1d1   :  { %385 = vmatmul.mubr.msk.f32.vlgmr.msra.gmra.mrb[4].mxu0 %vm169_vm1, %v229_v55 }
 0x2a4   :  { %v305_v57 = vpop.f32.mrb[4].mxu0 }
 0x2a5   :  { %v306_v58 = vadd.f32 %v305_v57, %v234_v56  ;;  %v386_v59 = vpop.f32.mrb[5].mxu0 }
 0x2a7   :  { %v313_v60 = vand.u32 2147483647, %v306_v58  ;;  %v312_v4 = vmax.f32 %v306_v58, 0.0 }
 0x2a9   :  { %v314_v61 = vsub.f32 0.0, %v313_v60 }
 0x2ab   :  { %v315_v62 = vmul.f32 1.442695, %v314_v61 }
 0x2ad   :  { %404 = vpow2.f32 %v315_v62 }
 0x2b7   :  { %v405_v63 = vpop.eup %404 }
 0x2b8   :  { %v317_v0 = vadd.f32 1.0, %v405_v63 }
 0x2ba   :  { %406 = vlog2.f32 %v317_v0 }
 0x2bb   :  { %408 = vtanh.f32 %v306_v58 }
 0x2c4   :  { %v407_v2 = vpop.eup %406 }
 0x2c5   :  { %v319_v5 = vmul.f32 0.6931472, %v407_v2  ;;  %v409_v8 = vpop.eup %408 }
 0x2c7   :  { %v320_v6 = vadd.f32 %v319_v5, %v312_v4 }
 0x2c9   :  { %v321_v7 = vadd.f32 1e-08, %v320_v6 }
 0x2cb   :  { %v324_v9 = vsel %vm323_vm3, %v321_v7, %v306_v58 }
 0x2cc   :  { %v325_v10 = vsel %vm322_vm4, %v409_v8, %v324_v9 }
 0x2cd   :  { %326 = vst [vmem:[#allocation2] sm:$0xff] %v325_v10 }
 0x2ce   :  { %421 = shalt.err (!%p418_p4)
}
 0x2cf   :  { %s422_s8 = scalar_lea.hbm %s551_s7, 128 }
 0x2d0   :  { %p423_p5 = scmp.ne.s32.totalorder %s551_s7, %s422_s8  ;;  %p426_p6 = scmp.lt.u32.totalorder %s422_s8, %s551_s7 }
 0x2d2   :  { %p428_p7 = pnand %p426_p6, %p423_p5 }
 0x2d4   :  { %431 = shalt.err (!%p428_p7)
}
 0x2d5   :  { %336 = dma.vmem_to_hbm [thread:$0]  %s334_s27, 128, %s551_s7, [#allocation3]  }
 0x2d6   :  { %432 = dma.done.wait [#allocation3], 128  }
 0x2d7   :  { %433 = vsyncadd [#allocation3], 4294967168 }
 0x2d8   :  { %340 = vsyncpa [#allocation3], 1 }

</bundles_post_ra>
